<compile_context>
chip_gen: v7x
topology: tpu7x:2x2x1
jax: 0.10.0
libtpu: 0.0.40
codegen_flags: <defaults>
</compile_context>

<pallas_src>
import functools
import math

import jax
import jax.numpy as jnp
from jax.experimental import pallas as pl
from jax.experimental.pallas import tpu as pltpu

EPS = 1e-10


def _block_mae_kernel(x_ref, y_ref, pw_ref, out_ref, *, block_rows):
    x = x_ref[...].astype(jnp.float32)          # (TR, WF) native dtype -> f32
    y = y_ref[...].astype(jnp.float32)
    d = x - y                                   # pool(x)-pool(y) == pool(x-y)
    step_tot = jnp.sum(x + y)                   # single full-tile reduction

    tr, wf = d.shape
    rb = tr // block_rows
    # Row-block pooling: split only the sublane dim (lane dim untouched, WF is
    # lane-dense after folding) and reduce -> XLU work, no MXU.
    dr = d.reshape(rb, block_rows, wf).sum(axis=1)                      # (RB, WF)
    # Column-block pooling: one MXU matmul with the resident 0/1 indicator.
    dp = jnp.dot(dr, pw_ref[...], preferred_element_type=jnp.float32)   # (RB, WB)
    step_acc = jnp.sum(jnp.abs(dp))

    # Private per-step output block: [0,0,0] <- acc, [0,0,1] <- tot, rest 0.
    sub = jax.lax.broadcasted_iota(jnp.int32, out_ref.shape, 1)
    lane = jax.lax.broadcasted_iota(jnp.int32, out_ref.shape, 2)
    out_ref[...] = jnp.where((sub == 0) & (lane == 0), step_acc,
                             jnp.where((sub == 0) & (lane == 1), step_tot, 0.0))


def _round_up(a, m):
    return (a + m - 1) // m * m


def _pick_fold(w, block_size):
    """Smallest k (k | block_size) folding k rows into lanes so that k*W is a
    multiple of 128 (lane-dense vregs / DMA rows).  k=1 (no fold) fallback is
    always correct."""
    if w % 128 == 0:
        return 1
    for k in range(1, block_size + 1):
        if block_size % k == 0 and (k * w) % 128 == 0 and k * w <= 4096:
            return k
    return 1


def _pick_row_tile(rows, wf, itemsize, block_rows, sublane_min, target_bytes):
    """Row tile that (a) is a whole number of folded block-rows, (b) satisfies
    the sublane tiling constraint, (c) is ~target_bytes per input tile.
    Returns (tile_rows, padded_rows); padded_rows >= rows means the caller
    zero-pads (exact: zeros contribute 0 to numerator and denominator)."""
    unit = (block_rows * sublane_min) // math.gcd(block_rows, sublane_min)
    bytes_per_row = max(wf * itemsize, 1)
    target_rows = max(unit, (target_bytes // bytes_per_row) // unit * unit)

    if rows <= target_rows:                       # single tile covers everything
        tr = _round_up(rows, unit)
        return tr, tr

    # Prefer an exact divisor tile near the target: no padding copy needed.
    best = None
    t = unit
    while t <= target_rows:
        if rows % t == 0:
            best = t
        t += unit
    if best is not None and best >= max(unit, target_rows // 4):
        return best, rows

    # Otherwise zero-pad up to a multiple of the target tile (big-tile path).
    return target_rows, _round_up(rows, target_rows)


def block_mae_loss(x, y, block_size=16):
    """x, y: (N, 1, H, W) with H, W divisible by block_size. Returns scalar."""
    assert x.shape == y.shape
    n, c, h, w = x.shape
    assert c == 1 and h % block_size == 0 and w % block_size == 0

    dtype = jnp.promote_types(x.dtype, y.dtype)   # stream native dtype (no f32 upcast)
    itemsize = jnp.dtype(dtype).itemsize
    sublane_min = max(8, 32 // max(itemsize, 1))  # 8 f32 / 16 bf16 / 32 int8

    # Fold k rows into lanes for lane-dense layout when W is narrow.
    k = _pick_fold(w, block_size)
    wf = k * w
    rows_f = (n * h) // k
    brf = block_size // k                         # folded rows per block row
    wb = w // block_size

    xf = x.astype(dtype).reshape(rows_f, wf)      # C == 1 -> free reshapes
    yf = y.astype(dtype).reshape(rows_f, wf)

    # Generation-aware VMEM budget (v7x: 64 MiB/TC, v5e/v6e: 128 MiB).
    try:
        phys = int(getattr(pltpu.get_tpu_info(), "vmem_capacity_bytes", 64 << 20))
    except Exception:                             # pragma: no cover
        phys = 64 << 20
    budget = phys * 5 // 8                        # ~40 MiB on v7x, ~80 MiB on v5e/v6e
    # 2 inputs x 2 pipeline buffers x tile must fit the budget (+ slack).
    target_tile_bytes = int(min(16 << 20, max(1 << 20, (budget - (8 << 20)) // 4)))

    tr, padded_rows = _pick_row_tile(rows_f, wf, itemsize, brf, sublane_min,
                                     target_tile_bytes)
    if padded_rows != rows_f:
        pad = padded_rows - rows_f
        xf = jnp.pad(xf, ((0, pad), (0, 0)))      # zeros are exact for this loss
        yf = jnp.pad(yf, ((0, pad), (0, 0)))
    num_tiles = padded_rows // tr

    # 0/1 column-block indicator (== the all-ones conv weight along W), folded:
    # lane l of the folded row maps to original column l % W.
    lane = jax.lax.broadcasted_iota(jnp.int32, (wf, wb), 0)
    blk = jax.lax.broadcasted_iota(jnp.int32, (wf, wb), 1)
    pw = (((lane % w) // block_size) == blk).astype(jnp.float32)        # (WF, WB)

    tile_bytes = tr * wf * itemsize
    vmem_limit = int(min(budget,
                         max(4 * tile_bytes + wf * wb * 4 + (6 << 20), 16 << 20)))

    cost = pl.CostEstimate(
        flops=int(2 * (padded_rows // brf) * wf * wb + 4 * padded_rows * wf),
        transcendentals=0,
        bytes_accessed=int(2 * padded_rows * wf * itemsize
                           + wf * wb * 4 + num_tiles * 8 * 128 * 4),
    )

    partials = pl.pallas_call(
        functools.partial(_block_mae_kernel, block_rows=brf),
        out_shape=jax.ShapeDtypeStruct((num_tiles, 8, 128), jnp.float32),
        grid_spec=pltpu.PrefetchScalarGridSpec(
            num_scalar_prefetch=0,
            grid=(num_tiles,),
            in_specs=[
                pl.BlockSpec((tr, wf), lambda i: (i, 0)),
                pl.BlockSpec((tr, wf), lambda i: (i, 0)),
                pl.BlockSpec((wf, wb), lambda i: (0, 0)),   # resident, DMA'd once
            ],
            out_specs=pl.BlockSpec((1, 8, 128), lambda i: (i, 0, 0)),
        ),
        compiler_params=pltpu.CompilerParams(
            # Steps are fully independent (private output blocks) -> safe to
            # shard across v7x's two TensorCores / megacore.
            dimension_semantics=("parallel",),
            vmem_limit_bytes=vmem_limit,
        ),
        cost_estimate=cost,
    )(xf, yf, pw)

    acc = jnp.sum(partials[:, 0, 0])
    tot = jnp.sum(partials[:, 0, 1])
    return acc / (tot + EPS)


def _reference(x, y, block_size=16):
    n, c, h, w = x.shape
    xb = x.astype(jnp.float32).reshape(n, c, h // block_size, block_size,
                                       w // block_size, block_size).sum(axis=(3, 5))
    yb = y.astype(jnp.float32).reshape(n, c, h // block_size, block_size,
                                       w // block_size, block_size).sum(axis=(3, 5))
    return jnp.sum(jnp.abs(xb - yb)) / (jnp.sum(x.astype(jnp.float32))
                                        + jnp.sum(y.astype(jnp.float32)) + EPS)


if __name__ == "__main__":
    key = jax.random.PRNGKey(0)
    k1, k2 = jax.random.split(key)
    # Small shapes: batch=2, channels=1 (module requires in_channels=1),
    # spatial=32 (two 16x16 blocks per side).
    x = jax.random.uniform(k1, (2, 1, 32, 32), dtype=jnp.float32)
    y = jax.random.uniform(k2, (2, 1, 32, 32), dtype=jnp.float32)

    loss = block_mae_loss(x, y, block_size=16)
    jax.block_until_ready(loss)

    ref = _reference(x, y, block_size=16)
    assert jnp.allclose(loss, ref, rtol=1e-5, atol=1e-6), (loss, ref)
    print("KERNEL_OK")
</pallas_src>

<mosaic_0001>
module attributes {stable_mosaic.version = 11 : i64} {
  func.func @_block_mae_kernel(%arg0: i32, %arg1: memref<16x128xf32, #tpu.memory_space<vmem>>, %arg2: memref<16x128xf32, #tpu.memory_space<vmem>>, %arg3: memref<128x2xf32, #tpu.memory_space<vmem>>, %arg4: memref<1x8x128xf32, #tpu.memory_space<vmem>>) attributes {dimension_semantics = [#tpu.dimension_semantics<parallel>], iteration_bounds = array<i64: 1>, scalar_prefetch = 0 : i64, scratch_operands = 0 : i64, tpu.core_type = #tpu.core_type<tc>, window_params = [{transform_indices = @transform_0, window_bounds = array<i64: 16, 128>}, {transform_indices = @transform_1, window_bounds = array<i64: 16, 128>}, {pipeline_mode = #tpu.pipeline_mode<synchronous>, transform_indices = @transform_2, window_bounds = array<i64: 128, 2>}, {transform_indices = @transform_3, window_bounds = array<i64: 1, 8, 128>}]} {
    %c0 = arith.constant 0 : index
    %c0_0 = arith.constant 0 : index
    %0 = vector.load %arg1[%c0, %c0_0] : memref<16x128xf32, #tpu.memory_space<vmem>>, vector<16x128xf32>
    %c0_1 = arith.constant 0 : index
    %c0_2 = arith.constant 0 : index
    %1 = vector.load %arg2[%c0_1, %c0_2] : memref<16x128xf32, #tpu.memory_space<vmem>>, vector<16x128xf32>
    %2 = arith.subf %0, %1 : vector<16x128xf32>
    %3 = arith.addf %0, %1 : vector<16x128xf32>
    %4 = vector.shape_cast %3 : vector<16x128xf32> to vector<1x16x128xf32>
    %cst = arith.constant dense<0.000000e+00> : vector<1xf32>
    %5 = vector.multi_reduction <add>, %4, %cst [1, 2] : vector<1x16x128xf32> to vector<1xf32>
    %6 = vector.shape_cast %5 : vector<1xf32> to vector<1x1x1xf32>
    %7 = vector.extract %6[0, 0, 0] : f32 from vector<1x1x1xf32>
    %8 = vector.shape_cast %2 : vector<16x128xf32> to vector<4x4x128xf32>
    %cst_3 = arith.constant dense<0.000000e+00> : vector<4x128xf32>
    %9 = vector.multi_reduction <add>, %8, %cst_3 [1] : vector<4x4x128xf32> to vector<4x128xf32>
    %c0_4 = arith.constant 0 : index
    %c0_5 = arith.constant 0 : index
    %10 = vector.load %arg3[%c0_4, %c0_5] : memref<128x2xf32, #tpu.memory_space<vmem>>, vector<128x2xf32>
    %cst_6 = arith.constant dense<0.000000e+00> : vector<4x2xf32>
    %11 = tpu.matmul %9, %10, %cst_6 {dimension_numbers = #tpu.dot_dimension_numbers<[1], [0], [0], [1], [0, 0, 1, 1], [], []>} : vector<4x128xf32>, vector<128x2xf32>, vector<4x2xf32> -> vector<4x2xf32>
    %12 = math.absf %11 : vector<4x2xf32>
    %13 = vector.shape_cast %12 : vector<4x2xf32> to vector<1x4x2xf32>
    %cst_7 = arith.constant dense<0.000000e+00> : vector<1xf32>
    %14 = vector.multi_reduction <add>, %13, %cst_7 [1, 2] : vector<1x4x2xf32> to vector<1xf32>
    %15 = vector.shape_cast %14 : vector<1xf32> to vector<1x1x1xf32>
    %16 = vector.extract %15[0, 0, 0] : f32 from vector<1x1x1xf32>
    %17 = tpu.iota {dimensions = array<i32: 1>} : vector<1x8x128xi32>
    %18 = tpu.iota {dimensions = array<i32: 2>} : vector<1x8x128xi32>
    %c0_i32 = arith.constant 0 : i32
    %19 = vector.broadcast %c0_i32 : i32 to vector<1x8x128xi32>
    %20 = arith.cmpi eq, %17, %19 : vector<1x8x128xi32>
    %c0_i32_8 = arith.constant 0 : i32
    %21 = vector.broadcast %c0_i32_8 : i32 to vector<1x8x128xi32>
    %22 = arith.cmpi eq, %18, %21 : vector<1x8x128xi32>
    %23 = arith.andi %20, %22 : vector<1x8x128xi1>
    %c0_i32_9 = arith.constant 0 : i32
    %24 = vector.broadcast %c0_i32_9 : i32 to vector<1x8x128xi32>
    %25 = arith.cmpi eq, %17, %24 : vector<1x8x128xi32>
    %c1_i32 = arith.constant 1 : i32
    %26 = vector.broadcast %c1_i32 : i32 to vector<1x8x128xi32>
    %27 = arith.cmpi eq, %18, %26 : vector<1x8x128xi32>
    %28 = arith.andi %25, %27 : vector<1x8x128xi1>
    %cst_10 = arith.constant 0.000000e+00 : f32
    %29 = vector.broadcast %7 : f32 to vector<1x8x128xf32>
    %30 = vector.broadcast %cst_10 : f32 to vector<1x8x128xf32>
    %31 = arith.select %28, %29, %30 : vector<1x8x128xi1>, vector<1x8x128xf32>
    %32 = vector.broadcast %16 : f32 to vector<1x8x128xf32>
    %33 = arith.select %23, %32, %31 : vector<1x8x128xi1>, vector<1x8x128xf32>
    %c0_11 = arith.constant 0 : index
    %c0_12 = arith.constant 0 : index
    %c0_13 = arith.constant 0 : index
    %34 = vector.load %arg4[%c0_11, %c0_12, %c0_13] : memref<1x8x128xf32, #tpu.memory_space<vmem>>, vector<1x8x128xf32>
    tpu.vector_store %arg4[%c0_11, %c0_12, %c0_13], %33 {strides = array<i32>} : memref<1x8x128xf32, #tpu.memory_space<vmem>>, vector<1x8x128xf32>,
    return
  }
  func.func @transform_0(%arg0: i32) -> (i32, i32) {
    %c0_i32 = arith.constant 0 : i32
    %c0_i32_0 = arith.constant 0 : i32
    return %arg0, %c0_i32 : i32, i32
  }
  func.func @transform_1(%arg0: i32) -> (i32, i32) {
    %c0_i32 = arith.constant 0 : i32
    %c0_i32_0 = arith.constant 0 : i32
    return %arg0, %c0_i32 : i32, i32
  }
  func.func @transform_2(%arg0: i32) -> (i32, i32) {
    %c0_i32 = arith.constant 0 : i32
    %c0_i32_0 = arith.constant 0 : i32
    %c0_i32_1 = arith.constant 0 : i32
    return %c0_i32, %c0_i32_0 : i32, i32
  }
  func.func @transform_3(%arg0: i32) -> (i32, i32, i32) {
    %c0_i32 = arith.constant 0 : i32
    %c0_i32_0 = arith.constant 0 : i32
    %c0_i32_1 = arith.constant 0 : i32
    return %arg0, %c0_i32, %c0_i32_0 : i32, i32, i32
  }
}

</mosaic_0001>

<bundles_post_ra>
// kernel: tpu_custom_call.1
= control target key start
LH: loop header
LB: loop body
LE: loop exit
PB: predicated region body
PF: predicated region fallthrough
CT: control target
= control target key end

     0   :  { %v313_v3 = vmov 0.0|0.0   ;;  %vm314_vm0 = vmmov 0   ;;  %v315_v6 = vmov 0.0   ;;  %vm39_vm1 = vcmask 1043456   ;;  %s421_s0 = inlined_call_operand.vmem [shape: f32[16,128], index: 0, kind: input, shape index: {}]   ;;  %s422_s1 = inlined_call_operand.vmem [shape: f32[16,128], index: 1, kind: input, shape index: {}]   ;;  %s423_s2 = inlined_call_operand.vmem [shape: f32[128,2], index: 2, kind: input, shape index: {}]   ;;  %s424_s3 = inlined_call_operand.hbm [shape: f32[1,8,128], index: 3, kind: output, shape index: {}]  }
   0x1   :  { %v68_v0 = vld [vmem:[%s423_s2] sm:$0xff]  ;;  %v69_v1 = vld [vmem:[%s423_s2 + $0x8] sm:$0xff]  ;;  %v70_v2 = vld [vmem:[%s423_s2 + $0x10] sm:$0xff]  ;;  %257 = vmatprep.subr.bf16.mxu0 %v313_v3  ;;  %254 = vmatprep.mubr.msk.f32.mxu0 %vm314_vm0, %v315_v6 }
   0x2   :  { %v258_v4 = vpack.c.bf16 %v69_v1, %v68_v0  ;;  %v71_v5 = vld [vmem:[%s423_s2 + $0x18] sm:$0xff]  ;;  %v72_v8 = vld [vmem:[%s423_s2 + $0x20] sm:$0xff]  ;;  %v73_v9 = vld [vmem:[%s423_s2 + $0x28] sm:$0xff] }
   0x3   :  { %v261_v7 = vpack.c.bf16 %v71_v5, %v70_v2  ;;  %v15_v10 = vld [vmem:[%s421_s0] sm:$0xff]  ;;  %v16_v11 = vld [vmem:[%s421_s0 + $0x8] sm:$0xff]  ;;  %v264_v12 = vpack.c.bf16 %v73_v9, %v72_v8 }
   0x4   :  { %259 = vmatpush3.bf16.msra.mxu0 %v258_v4  ;;  %v17_v13 = vld [vmem:[%s422_s1] sm:$0xff]  ;;  %v18_v14 = vld [vmem:[%s422_s1 + $0x8] sm:$0xff] }
   0x5   :  { %260 = vmatprep.subr.bf16.mxu0 %v313_v3 }
   0x6   :  { %8 = vsyncpa [#allocation3], 0  ;;  %v19_v15 = vsub.f32 %v15_v10, %v17_v13  ;;  %v20_v16 = vsub.f32 %v16_v11, %v18_v14  ;;  %v21_v17 = vadd.f32 %v17_v13, %v15_v10  ;;  %v22_v18 = vadd.f32 %v18_v14, %v16_v11  ;;  %v74_v19 = vld [vmem:[%s423_s2 + $0x30] sm:$0xff]  ;;  %v75_v20 = vld [vmem:[%s423_s2 + $0x38] sm:$0xff]  ;;  %s316_s23 = smov [#allocation2]  }
   0x7   :  { %v267_v28 = vpack.c.bf16 %v75_v20, %v74_v19  ;;  %v76_v31 = vld [vmem:[%s423_s2 + $0x40] sm:$0xff]  ;;  %v77_v32 = vld [vmem:[%s423_s2 + $0x48] sm:$0xff]  ;;  %v78_v42 = vld [vmem:[%s423_s2 + $0x50] sm:$0xff]  ;;  %vm88_vm2 = vcmask 1041409   ;;  %vm90_vm3 = vcmask 1042434   ;;  %vm92_vm4 = vcmask 1043459  }
   0x8   :  { %262 = vmatpush3.bf16.msra.mxu0 %v261_v7  ;;  %v35_v21 = vcombine.high %v19_v15, %v19_v15  ;;  %v36_v22 = vcombine.high %v20_v16, %v20_v16  ;;  %v40_v23 = vsel %vm39_vm1, %v19_v15, 0.0  ;;  %v54_v24 = vsel %vm39_vm1, %v20_v16, 0.0  ;;  %v79_v43 = vld [vmem:[%s423_s2 + $0x58] sm:$0xff]  ;;  %v80_v52 = vld [vmem:[%s423_s2 + $0x60] sm:$0xff]  ;;  %v81_v53 = vld [vmem:[%s423_s2 + $0x68] sm:$0xff]  ;;  %s197_s24 = sshll.u32 %s316_s23, 4  ;;  %s198_s24 = int_to_ptr.vmem [resolvable:$true] %s197_s24 }
   0x9   :  { %263 = vmatprep.subr.bf16.mxu0 %v313_v3  ;;  %v41_v25 = vrot.slane %v40_v23, 4  ;;  %v55_v26 = vrot.slane %v54_v24, 4  ;;  %v23_v27 = vadd.f32 %v22_v18, %v21_v17  ;;  %v270_v41 = vpack.c.bf16 %v77_v32, %v76_v31  ;;  %v82_v60 = vld [vmem:[%s423_s2 + $0x70] sm:$0xff]  ;;  %v83_v61 = vld [vmem:[%s423_s2 + $0x78] sm:$0xff]  ;;  %s289_s26 = scalar_lea.vmem %s198_s24, 128  ;;  %p294_p1 = scmp.lt.s32.totalorder %s198_s24, %s198_s24 }
   0xa   :  { %v47_v29 = vsel %vm39_vm1, %v35_v21, 0.0  ;;  %v61_v30 = vsel %vm39_vm1, %v36_v22, 0.0  ;;  %v273_v50 = vpack.c.bf16 %v79_v43, %v78_v42  ;;  %v276_v58 = vpack.c.bf16 %v81_v53, %v80_v52  ;;  %p290_p0 = scmp.ne.s32.totalorder %s198_s24, %s289_s26  ;;  %p295_p2 = scmp.lt.s32.totalorder %s289_s26, %s289_s26 }
   0xb   :  { %v42_v33 = vadd.f32 %v41_v25, %v40_v23  ;;  %v48_v34 = vrot.slane %v47_v29, 4  ;;  %v56_v35 = vadd.f32 %v55_v26, %v54_v24  ;;  %v62_v36 = vrot.slane %v61_v30, 4  ;;  %24 = vadd.xlane.f32.xlu0 %v23_v27 }
   0xc   :  { %265 = vmatpush3.bf16.msra.mxu0 %v264_v12  ;;  %v279_v0 = vpack.c.bf16 %v83_v61, %v82_v60  ;;  %vm166_vm5 = vcmask 11264   ;;  %v177_v22 = vlaneseq  ;;  %p296_p3 = por %p295_p2, %p294_p1 }
   0xd   :  { %266 = vmatprep.subr.bf16.mxu0 %v313_v3  ;;  %v43_v37 = vrot.slane %v42_v33, 2  ;;  %v49_v38 = vadd.f32 %v48_v34, %v47_v29  ;;  %v57_v39 = vrot.slane %v56_v35, 2  ;;  %v63_v40 = vadd.f32 %v62_v36, %v61_v30 }
   0xe   :  { %v178_v23 = vshrl.u32 %v177_v22, 7  ;;  %v180_v24 = vand.u32 127, %v177_v22  ;;  %p297_p4 = pnand %p296_p3, %p290_p0 }
   0xf   :  { %v44_v44 = vadd.f32 %v43_v37, %v42_v33  ;;  %v50_v45 = vrot.slane %v49_v38, 2  ;;  %v58_v46 = vadd.f32 %v57_v39, %v56_v35  ;;  %v64_v47 = vrot.slane %v63_v40, 2 }
  0x10   :  { %268 = vmatpush3.bf16.msra.mxu0 %v267_v28  ;;  %vm181_vm6 = vcmp.eq.s32.totalorder %v178_v23, 0  ;;  %vm184_vm7 = vcmp.eq.s32.totalorder %v180_v24, 1  ;;  %vm182_vm8 = vcmp.eq.s32.totalorder %v180_v24, 0 }
  0x11   :  { %269 = vmatprep.subr.bf16.mxu0 %v313_v3  ;;  %v45_v48 = vrot.slane %v44_v44, 1  ;;  %v51_v49 = vadd.f32 %v50_v45, %v49_v38  ;;  %v65_v51 = vadd.f32 %v64_v47, %v63_v40  ;;  %v59_v55 = vrot.slane %v58_v46, 1  ;;  %vm185_vm9 = vmand %vm181_vm6, %vm184_vm7 }
  0x12   :  { %vm183_vm10 = vmand %vm181_vm6, %vm182_vm8 }
  0x13   :  { %v52_v54 = vrot.slane %v51_v49, 1  ;;  %v46_v56 = vadd.f32 %v45_v48, %v44_v44  ;;  %v66_v59 = vrot.slane %v65_v51, 1  ;;  %v60_v62 = vadd.f32 %v59_v55, %v58_v46 }
  0x14   :  { %271 = vmatpush3.bf16.msra.mxu0 %v270_v41 }
  0x15   :  { %272 = vmatprep.subr.bf16.mxu0 %v313_v3  ;;  %v53_v57 = vadd.f32 %v52_v54, %v51_v49  ;;  %v67_v1 = vadd.f32 %v66_v59, %v65_v51 }
  0x17   :  { %v89_v63 = vsel %vm88_vm2, %v53_v57, %v46_v56 }
  0x18   :  { %274 = vmatpush3.bf16.msra.mxu0 %v273_v50  ;;  %v91_v2 = vsel %vm90_vm3, %v60_v62, %v89_v63 }
  0x19   :  { %275 = vmatprep.subr.bf16.mxu0 %v313_v3  ;;  %v93_v4 = vsel %vm92_vm4, %v67_v1, %v91_v2 }
  0x1c   :  { %277 = vmatpush3.bf16.msra.mxu0 %v276_v58 }
  0x1d   :  { %278 = vmatprep.subr.bf16.mxu0 %v313_v3 }
  0x20   :  { %280 = vmatpush3.bf16.msra.mxu0 %v279_v0 }
  0x23   :  { %255 = vmatmul.mubr.f32.vlgmr.msra.gmra.mrb[0].mxu0 %v93_v4 }
  0x98   :  { %v25_v5 = vpop.xlane.xlu0 %24 }
  0x99   :  { %v26_v9 = vrot.slane %v25_v5, 4 }
  0x9b   :  { %v27_v11 = vadd.f32 %v26_v9, %v25_v5 }
  0x9d   :  { %v28_v12 = vrot.slane %v27_v11, 2 }
  0x9f   :  { %v29_v13 = vadd.f32 %v28_v12, %v27_v11 }
  0xa1   :  { %v30_v14 = vrot.slane %v29_v13, 1 }
  0xa3   :  { %v31_v15 = vadd.f32 %v30_v14, %v29_v13 }
  0xa5   :  { %281 = vpush %v31_v15 }
  0xd6   :  { %s282_s2 = spop %281 }
  0xd7   :  { %v186_v25 = vstv %s282_s2 }
  0xd8   :  { %v187_v26 = vsel %vm185_vm9, %v186_v25, 0.0 }
  0xf6   :  { %v161_v6 = vpop.f32.mrb[0].mxu0 }
  0xf7   :  { %v165_v7 = vand.u32 2147483647, %v161_v6  ;;  %v256_v8 = vpop.f32.mrb[1].mxu0 }
  0xf9   :  { %v167_v10 = vsel %vm166_vm5, %v165_v7, 0.0 }
  0xfa   :  { %168 = vadd.xlane.f32.xlu0 %v167_v10 }
 0x187   :  { %v169_v3 = vpop.xlane.xlu0 %168 }
 0x188   :  { %v170_v16 = vrot.slane %v169_v3, 4 }
 0x18a   :  { %v171_v17 = vadd.f32 %v170_v16, %v169_v3 }
 0x18c   :  { %v172_v18 = vrot.slane %v171_v17, 2 }
 0x18e   :  { %v173_v19 = vadd.f32 %v172_v18, %v171_v17 }
 0x190   :  { %v174_v20 = vrot.slane %v173_v19, 1 }
 0x192   :  { %v175_v21 = vadd.f32 %v174_v20, %v173_v19 }
 0x194   :  { %283 = vpush %v175_v21 }
 0x1c5   :  { %s284_s25 = spop %283 }
 0x1c6   :  { %v188_v27 = vstv %s284_s25 }
 0x1c7   :  { %v189_v28 = vsel %vm183_vm10, %v188_v27, %v187_v26 }
 0x1c8   :  { %190 = vst [vmem:[#allocation2] sm:$0xff] %v189_v28 }
 0x1c9   :  { %300 = shalt.err (!%p297_p4)
}
 0x1ca   :  { %s301_s29 = scalar_lea.hbm %s424_s3, 128 }
 0x1cb   :  { %p302_p5 = scmp.ne.s32.totalorder %s424_s3, %s301_s29  ;;  %p305_p6 = scmp.lt.u32.totalorder %s301_s29, %s424_s3 }
 0x1cd   :  { %p307_p7 = pnand %p305_p6, %p302_p5 }
 0x1cf   :  { %310 = shalt.err (!%p307_p7)
}
 0x1d0   :  { %200 = dma.vmem_to_hbm [thread:$0]  %s198_s24, 128, %s424_s3, [#allocation3]  }
 0x1d1   :  { %311 = dma.done.wait [#allocation3], 128  }
 0x1d2   :  { %312 = vsyncadd [#allocation3], 4294967168 }
 0x1d3   :  { %204 = vsyncpa [#allocation3], 1 }

</bundles_post_ra>
